<compile_context>
chip_gen: v5e
topology: v5e:2x2
jax: 0.10.0
libtpu: 0.0.40
codegen_flags: <defaults>
</compile_context>

<pallas_src>
import functools

import jax
import jax.numpy as jnp
from jax import lax
from jax.experimental import pallas as pl
from jax.experimental.pallas import tpu as pltpu


_LANE = 128                         # vreg lane width
_VMEM_LIMIT = 32 * 1024 * 1024      # explicit scoped-VMEM budget for all calls


def _sublane_unit(dtype):
    """(8,128) is the f32 minimum tile; packed dtypes need 16/32 sublanes."""
    return max(8, 32 // jnp.dtype(dtype).itemsize)


def _block_byte_budget():
    """Per-buffer block budget: bigger blocks pay off on v6e/v7x HBM BW."""
    try:
        kind = jax.devices()[0].device_kind.lower()
    except Exception:
        kind = ""
    if "v6" in kind or "v7" in kind:
        return 4 * 1024 * 1024
    return 2 * 1024 * 1024          # v5e & older / unknown


def _pick_tiles(R, S, dtype, budget_bytes):
    """Largest aligned (rows, lanes) tile that fits the per-block byte budget."""
    itemsize = jnp.dtype(dtype).itemsize
    unit_r = _sublane_unit(dtype)
    cap_lanes = max(_LANE, (budget_bytes // (256 * itemsize)) // _LANE * _LANE)
    tile_s = S if S < _LANE else min((S // _LANE) * _LANE, cap_lanes)
    cap_rows = max(unit_r,
                   (budget_bytes // max(tile_s * itemsize, 1)) // unit_r * unit_r)
    tile_r = R if R < unit_r else min((R // unit_r) * unit_r, cap_rows)
    return tile_r, tile_s


def _maybe_split_for_megacore(tile_r, tile_s, R, S, unit_r):
    """If the whole tensor fits one block but is big enough to care, split the
    row (preferred) or lane axis in two so both v7x TensorCores get a block."""
    if pl.cdiv(R, tile_r) * pl.cdiv(S, tile_s) > 1:
        return tile_r, tile_s
    if R * S < 64 * 1024:            # tiny: a 2nd grid step isn't worth it
        return tile_r, tile_s
    if tile_r >= 2 * unit_r:
        tile_r = pl.cdiv(tile_r // unit_r, 2) * unit_r
    elif tile_s >= 2 * _LANE:
        tile_s = pl.cdiv(tile_s // _LANE, 2) * _LANE
    return tile_r, tile_s


# --------------------------- affine (fused mul-add) ------------------------- #
def _affine_rows_kernel(x_ref, p_ref, o_ref):
    # p_ref: (tile_r, 2) f32; column 0 = offset, column 1 = scale (per row).
    x = x_ref[...].astype(jnp.float32)
    off = p_ref[:, 0:1]
    s = p_ref[:, 1:2]
    o_ref[...] = (x * s + off).astype(o_ref.dtype)


def _affine_lanes_kernel(x_ref, p_ref, o_ref):
    # p_ref: (2, tile_l) f32; row 0 = offset, row 1 = scale (per lane).
    x = x_ref[...].astype(jnp.float32)
    off = p_ref[0:1, :]
    s = p_ref[1:2, :]
    o_ref[...] = (x * s + off).astype(o_ref.dtype)


def _affine_pallas(x2d, params, params_along_rows):
    R, S = x2d.shape
    budget = _block_byte_budget()
    tile_r, tile_s = _pick_tiles(R, S, x2d.dtype, budget)
    tile_r, tile_s = _maybe_split_for_megacore(
        tile_r, tile_s, R, S, _sublane_unit(x2d.dtype))
    grid = (pl.cdiv(R, tile_r), pl.cdiv(S, tile_s))
    itemsize = jnp.dtype(x2d.dtype).itemsize
    cost = pl.CostEstimate(
        flops=2 * R * S, transcendentals=0,
        bytes_accessed=2 * R * S * itemsize + params.size * 4)

    if params_along_rows:
        kernel = _affine_rows_kernel
        p_spec = pl.BlockSpec((tile_r, 2), lambda i, j: (i, 0))
    else:
        kernel = _affine_lanes_kernel
        p_spec = pl.BlockSpec((2, tile_s), lambda i, j: (0, j))

    return pl.pallas_call(
        kernel,
        out_shape=jax.ShapeDtypeStruct((R, S), x2d.dtype),
        grid_spec=pltpu.PrefetchScalarGridSpec(
            num_scalar_prefetch=0,
            grid=grid,
            in_specs=[pl.BlockSpec((tile_r, tile_s), lambda i, j: (i, j)),
                      p_spec],
            out_specs=pl.BlockSpec((tile_r, tile_s), lambda i, j: (i, j)),
        ),
        compiler_params=pltpu.CompilerParams(
            dimension_semantics=("parallel", "parallel"),
            vmem_limit_bytes=_VMEM_LIMIT),
        cost_estimate=cost,
    )(x2d, params)


# -------------- data-dependent init: two-pass per-row reductions ------------ #
def _row_sum_kernel(x_ref, sum_ref, *, total_s, tile_s, needs_mask):
    j = pl.program_id(1)

    @pl.when(j == 0)
    def _init():
        sum_ref[...] = jnp.zeros_like(sum_ref)

    x = x_ref[...].astype(jnp.float32)
    if needs_mask:   # only compiled in when S % tile_s != 0
        col = lax.broadcasted_iota(jnp.int32, x.shape, 1) + j * tile_s
        x = jnp.where(col < total_s, x, 0.0)
    sum_ref[...] += jnp.sum(x, axis=1, keepdims=True)


def _row_centered_sq_kernel(x_ref, mean_ref, sq_ref, *, total_s, tile_s,
                            needs_mask):
    j = pl.program_id(1)

    @pl.when(j == 0)
    def _init():
        sq_ref[...] = jnp.zeros_like(sq_ref)

    d = x_ref[...].astype(jnp.float32) - mean_ref[...]
    if needs_mask:
        col = lax.broadcasted_iota(jnp.int32, d.shape, 1) + j * tile_s
        d = jnp.where(col < total_s, d, 0.0)
    sq_ref[...] += jnp.sum(d * d, axis=1, keepdims=True)


def _row_sum_pallas(x2d):
    R, S = x2d.shape
    tile_r, tile_s = _pick_tiles(R, S, x2d.dtype, _block_byte_budget())
    grid = (pl.cdiv(R, tile_r), pl.cdiv(S, tile_s))
    return pl.pallas_call(
        functools.partial(_row_sum_kernel, total_s=S, tile_s=tile_s,
                          needs_mask=(S % tile_s != 0)),
        out_shape=jax.ShapeDtypeStruct((R, 1), jnp.float32),
        grid_spec=pltpu.PrefetchScalarGridSpec(
            num_scalar_prefetch=0,
            grid=grid,
            in_specs=[pl.BlockSpec((tile_r, tile_s), lambda i, j: (i, j))],
            out_specs=pl.BlockSpec((tile_r, 1), lambda i, j: (i, 0)),
        ),
        compiler_params=pltpu.CompilerParams(
            dimension_semantics=("parallel", "arbitrary"),
            vmem_limit_bytes=_VMEM_LIMIT),
    )(x2d)


def _row_centered_sq_pallas(x2d, mean_rows):
    R, S = x2d.shape
    tile_r, tile_s = _pick_tiles(R, S, x2d.dtype, _block_byte_budget())
    grid = (pl.cdiv(R, tile_r), pl.cdiv(S, tile_s))
    return pl.pallas_call(
        functools.partial(_row_centered_sq_kernel, total_s=S, tile_s=tile_s,
                          needs_mask=(S % tile_s != 0)),
        out_shape=jax.ShapeDtypeStruct((R, 1), jnp.float32),
        grid_spec=pltpu.PrefetchScalarGridSpec(
            num_scalar_prefetch=0,
            grid=grid,
            in_specs=[pl.BlockSpec((tile_r, tile_s), lambda i, j: (i, j)),
                      pl.BlockSpec((tile_r, 1), lambda i, j: (i, 0))],
            out_specs=pl.BlockSpec((tile_r, 1), lambda i, j: (i, 0)),
        ),
        compiler_params=pltpu.CompilerParams(
            dimension_semantics=("parallel", "arbitrary"),
            vmem_limit_bytes=_VMEM_LIMIT),
    )(x2d, mean_rows)


# --------------------------------- module glue ------------------------------ #
def actnorm_init_stats(x, scale=1.0):
    """Data-dependent init (two-pass, matches the PyTorch formulation).
    Returns (bias, logs) shaped (1, c, 1, 1)."""
    b, c, h, w = x.shape
    S = h * w
    n = b * S
    x2d = x.reshape(b * c, S)
    row_sum = _row_sum_pallas(x2d)                        # (b*c, 1)
    mean_c = row_sum.reshape(b, c).sum(axis=0) / n        # (c,)
    mean_rows = jnp.tile(mean_c, b).reshape(b * c, 1)
    row_sq = _row_centered_sq_pallas(x2d, mean_rows)      # (b*c, 1)
    vars_c = row_sq.reshape(b, c).sum(axis=0) / n
    bias = (-mean_c).reshape(1, c, 1, 1)
    logs = jnp.log(scale / (jnp.sqrt(vars_c) + 1e-6)).reshape(1, c, 1, 1)
    return bias, logs


def actnorm_apply(x, bias, logs, logdet=None, reverse=False):
    """x: (b, c, h, w); bias/logs: (1, c, 1, 1). Returns (y, logdet)."""
    b, c, h, w = x.shape
    S = h * w

    bias_c = bias.reshape(c).astype(jnp.float32)
    logs_c = logs.reshape(c).astype(jnp.float32)
    if reverse:
        scale_c = jnp.exp(-logs_c)          # y = x * exp(-logs) - bias
        offset_c = -bias_c
    else:
        scale_c = jnp.exp(logs_c)           # y = x * exp(logs) + bias * exp(logs)
        offset_c = bias_c * scale_c

    # Layout choice: lane-dense fallback when the spatial extent is small or
    # not lane-aligned (keeps output stores full-width).
    use_lane_layout = (S % _LANE != 0) or (S < 4 * _LANE)
    if use_lane_layout:
        x2d = x.reshape(b, c * S)                               # free reshape
        params = jnp.stack([jnp.repeat(offset_c, S),
                            jnp.repeat(scale_c, S)], axis=0)    # (2, c*h*w) f32
        y2d = _affine_pallas(x2d, params, params_along_rows=False)
    else:
        x2d = x.reshape(b * c, S)                               # free reshape
        params = jnp.stack([jnp.tile(offset_c, b),
                            jnp.tile(scale_c, b)], axis=1)      # (b*c, 2) f32
        y2d = _affine_pallas(x2d, params, params_along_rows=True)
    y = y2d.reshape(b, c, h, w)

    if logdet is not None:
        # TODO(synk): logdet accumulation stays as tiny scalar glue JAX.
        dlogdet = jnp.sum(logs_c) * (h * w)
        if reverse:
            dlogdet = -dlogdet
        logdet = logdet + dlogdet
    return y, logdet


class ActNorm2d:
    """JAX/Pallas port of the _ActNorm forward semantics (4-D NCHW input)."""

    def __init__(self, num_features, scale=1.0):
        self.num_features = num_features
        self.scale = scale
        self.bias = jnp.zeros((1, num_features, 1, 1), jnp.float32)
        self.logs = jnp.zeros((1, num_features, 1, 1), jnp.float32)
        self.inited = False
        self.training = True

    def _check_input_dim(self, x):
        assert x.ndim == 4, "ActNorm2d expects NCHW input"
        assert x.shape[1] == self.num_features

    def initialize_parameters(self, x):
        if not self.training:
            raise ValueError("In Eval mode, but ActNorm not inited")
        self.bias, self.logs = actnorm_init_stats(x, self.scale)
        self.inited = True

    def __call__(self, x, logdet=None, reverse=False):
        self._check_input_dim(x)
        if not self.inited:
            self.initialize_parameters(x)
        return actnorm_apply(x, self.bias, self.logs, logdet=logdet,
                             reverse=reverse)


# ------------------------------------ demo ---------------------------------- #
if __name__ == "__main__":
    key = jax.random.PRNGKey(0)

    # ---- case 1: small spatial extent -> lane-dense (b, c*h*w) layout ----
    b, c, h, w = 2, 4, 16, 16
    x = jax.random.normal(key, (b, c, h, w), dtype=jnp.float32) * 1.7 + 0.3
    logdet0 = jnp.zeros((b,), jnp.float32)

    an = ActNorm2d(c, scale=1.0)
    y, logdet_fwd = an(x, logdet=logdet0, reverse=False)   # triggers init
    jax.block_until_ready((y, logdet_fwd))

    # matches the plain-JAX reference of the module's forward
    y_ref = (x + an.bias) * jnp.exp(an.logs)
    assert jnp.allclose(y, y_ref, atol=1e-5, rtol=1e-5), "affine mismatch"

    # init makes the output per-channel ~zero-mean / ~unit-variance
    m = jnp.mean(y, axis=(0, 2, 3))
    v = jnp.mean((y - m.reshape(1, c, 1, 1)) ** 2, axis=(0, 2, 3))
    assert jnp.max(jnp.abs(m)) < 1e-3, "init mean off"
    assert jnp.max(jnp.abs(v - 1.0)) < 1e-2, "init var off"

    # logdet contribution = sum(logs) * h * w
    dlogdet_ref = jnp.sum(an.logs) * h * w
    assert jnp.allclose(logdet_fwd, logdet0 + dlogdet_ref,
                        atol=1e-3, rtol=1e-5), "logdet fwd mismatch"

    # reverse inverts forward and cancels the logdet contribution
    x_rec, logdet_rt = an(y, logdet=logdet_fwd, reverse=True)
    jax.block_until_ready((x_rec, logdet_rt))
    assert jnp.allclose(x_rec, x, atol=1e-5, rtol=1e-5), "reverse mismatch"
    assert jnp.allclose(logdet_rt, logdet0, atol=1e-4), "logdet roundtrip mismatch"

    # ---- case 2: lane-aligned spatial extent -> per-row (b*c, h*w) layout ----
    b2, c2, h2, w2 = 2, 4, 32, 32
    x2 = jax.random.normal(jax.random.PRNGKey(1), (b2, c2, h2, w2),
                           dtype=jnp.float32) * 0.5 - 1.1
    an2 = ActNorm2d(c2, scale=1.0)
    y2, _ = an2(x2, logdet=None, reverse=False)
    jax.block_until_ready(y2)
    y2_ref = (x2 + an2.bias) * jnp.exp(an2.logs)
    assert jnp.allclose(y2, y2_ref, atol=1e-5, rtol=1e-5), "affine mismatch (row layout)"
    x2_rec, _ = an2(y2, logdet=None, reverse=True)
    jax.block_until_ready(x2_rec)
    assert jnp.allclose(x2_rec, x2, atol=1e-5, rtol=1e-5), "reverse mismatch (row layout)"

    print("KERNEL_OK")
</pallas_src>

<mosaic_0001>
module attributes {stable_mosaic.version = 11 : i64} {
  func.func @_row_sum_kernel(%arg0: i32, %arg1: i32, %arg2: memref<8x256xf32, #tpu.memory_space<vmem>>, %arg3: memref<8x1xf32, #tpu.memory_space<vmem>>) attributes {dimension_semantics = [#tpu.dimension_semantics<parallel>, #tpu.dimension_semantics<arbitrary>], iteration_bounds = array<i64: 1, 1>, scalar_prefetch = 0 : i64, scratch_operands = 0 : i64, tpu.core_type = #tpu.core_type<tc>, window_params = [{transform_indices = @transform_0, window_bounds = array<i64: 8, 256>}, {transform_indices = @transform_1, window_bounds = array<i64: 8, 1>}]} {
    %c0_i32 = arith.constant 0 : i32
    %0 = arith.cmpi eq, %arg1, %c0_i32 : i32
    %1 = arith.extui %0 : i1 to i32
    %c0_i32_0 = arith.constant 0 : i32
    %2 = arith.cmpi ne, %1, %c0_i32_0 : i32
    scf.if %2 {
      %cst_6 = arith.constant 0.000000e+00 : f32
      %9 = vector.broadcast %cst_6 : f32 to vector<8x1xf32>
      %c0_7 = arith.constant 0 : index
      %c0_8 = arith.constant 0 : index
      %10 = vector.load %arg3[%c0_7, %c0_8] : memref<8x1xf32, #tpu.memory_space<vmem>>, vector<8x1xf32>
      tpu.vector_store %arg3[%c0_7, %c0_8], %9 {strides = array<i32>} : memref<8x1xf32, #tpu.memory_space<vmem>>, vector<8x1xf32>,
    } else {
    }
    %c0 = arith.constant 0 : index
    %c0_1 = arith.constant 0 : index
    %3 = vector.load %arg2[%c0, %c0_1] : memref<8x256xf32, #tpu.memory_space<vmem>>, vector<8x256xf32>
    %c0_2 = arith.constant 0 : index
    %c0_3 = arith.constant 0 : index
    %4 = vector.load %arg3[%c0_2, %c0_3] : memref<8x1xf32, #tpu.memory_space<vmem>>, vector<8x1xf32>
    %cst = arith.constant dense<0.000000e+00> : vector<8xf32>
    %5 = vector.multi_reduction <add>, %3, %cst [1] : vector<8x256xf32> to vector<8xf32>
    %6 = vector.shape_cast %5 : vector<8xf32> to vector<8x1xf32>
    %7 = arith.addf %4, %6 : vector<8x1xf32>
    %c0_4 = arith.constant 0 : index
    %c0_5 = arith.constant 0 : index
    %8 = vector.load %arg3[%c0_4, %c0_5] : memref<8x1xf32, #tpu.memory_space<vmem>>, vector<8x1xf32>
    tpu.vector_store %arg3[%c0_4, %c0_5], %7 {strides = array<i32>} : memref<8x1xf32, #tpu.memory_space<vmem>>, vector<8x1xf32>,
    return
  }
  func.func @transform_0(%arg0: i32, %arg1: i32) -> (i32, i32) {
    %c0_i32 = arith.constant 0 : i32
    return %arg0, %arg1 : i32, i32
  }
  func.func @transform_1(%arg0: i32, %arg1: i32) -> (i32, i32) {
    %c0_i32 = arith.constant 0 : i32
    %c0_i32_0 = arith.constant 0 : i32
    return %arg0, %c0_i32 : i32, i32
  }
}

</mosaic_0001>

<bundles_post_ra>
// kernel: tpu_custom_call.1
= control target key start
LH: loop header
LB: loop body
LE: loop exit
PB: predicated region body
PF: predicated region fallthrough
CT: control target
= control target key end

     0   :  { %6 = vsyncpa [#allocation3], 0  ;;  %s70_s9 = smov [#allocation2]   ;;  %s94_s0 = inlined_call_operand.hbm [shape: f32[8,256], index: 0, kind: input, shape index: {}]   ;;  %s95_s1 = inlined_call_operand.vmem [shape: f32[8,1], index: 1, kind: output, shape index: {}]  }
   0x1   :  { %s12_s8 = sshll.u32 %s94_s0, 4  ;;  %s14_s10 = sshll.u32 %s70_s9, 4  ;;  %s13_s8 = int_to_ptr.hbm [resolvable:$true] %s12_s8  ;;  %s15_s10 = int_to_ptr.vmem [resolvable:$true] %s14_s10 }
   0x2   :  { %17 = dma.hbm_to_vmem [thread:$0]  %s13_s8, 256, %s15_s10, [#allocation3]  }
   0x3   :  { %68 = dma.done.wait [#allocation3], 256  }
   0x4   :  { %69 = vsyncadd [#allocation3], 4294967040  ;;  %vm26_vm0 = vcmask 7168   ;;  %v71_v0 = vmov 0.0   ;;  %v28_v1 = vld [vmem:[#allocation2] sm:$0xff]  ;;  %v29_v2 = vld [vmem:[#allocation2 + $0x8] sm:$0xff] }
   0x5   :  { %27 = vst.msk [vmem:[%s95_s1] sm:$0xff] %vm26_vm0, %v71_v0  ;;  %v31_v3 = vadd.f32 %v29_v2, %v28_v1 }
   0x7   :  { %32 = vadd.xlane.f32.xlu0 %v31_v3 }
   0xc   :  { %v30_v4 = vld [vmem:[%s95_s1] sm:$0xff] }
  0x7a   :  { %v33_v5 = vpop.xlane.xlu0 %32 }
  0x7b   :  { %v34_v6 = vadd.f32 %v33_v5, %v30_v4 }
  0x7d   :  { %36 = vst.msk [vmem:[%s95_s1] sm:$0xff] %vm26_vm0, %v34_v6 }
  0x7e   :  { %41 = vsyncpa [#allocation3], 1 }

</bundles_post_ra>
